<compile_context>
chip_gen: v7x
topology: tpu7x:2x2x1
jax: 0.10.0
libtpu: 0.0.40
codegen_flags: <defaults>
</compile_context>

<pallas_src>
import jax
import jax.numpy as jnp
from jax.experimental import pallas as pl
from jax.experimental.pallas import tpu as pltpu


def _sdpa_kernel(temp_ref, q_ref, k_ref, v_ref, out_ref, attn_ref, log_attn_ref):
    # Blocks: q (BB, TQ, D), k (BB, Lk, D), v (BB, Lk, Dv)
    inv_temp = 1.0 / temp_ref[0]                        # f32 scalar from SMEM

    q = q_ref[...]
    k = k_ref[...]
    v = v_ref[...]

    # scores = (q @ k^T) / temperature   (batched contraction over D, f32 acc)
    s = jnp.einsum("bqd,bkd->bqk", q, k,
                   preferred_element_type=jnp.float32)   # (BB, TQ, Lk) f32
    s = s * inv_temp

    # numerically-stable softmax / log_softmax over the last axis (dim=2)
    m = jnp.max(s, axis=-1, keepdims=True)
    shifted = s - m
    exp_s = jnp.exp(shifted)
    denom = jnp.sum(exp_s, axis=-1, keepdims=True)       # (BB, TQ, 1)
    inv_denom = pl.reciprocal(denom, approx=False)       # per-row reciprocal
    attn = exp_s * inv_denom
    log_attn = shifted - jnp.log(denom)

    # output = attn @ v  (probabilities in input dtype -> bf16 MXU path when
    # inputs are bf16; f32 accumulation preserved)
    p = attn.astype(v_ref.dtype)
    out = jnp.einsum("bqk,bkd->bqd", p, v,
                     preferred_element_type=jnp.float32)  # (BB, TQ, Dv)

    out_ref[...] = out.astype(out_ref.dtype)
    attn_ref[...] = attn.astype(attn_ref.dtype)
    log_attn_ref[...] = log_attn.astype(log_attn_ref.dtype)


def _choose_tiles(B, Lq, Lk, D, Dv, in_itemsize, attn_itemsize,
                  budget_bytes=6 * 1024 * 1024):
    """Pick (BB, TQ) so one grid-step's block data stays under the budget."""

    def step_bytes(bb, tq):
        in_b = bb * (tq * D + Lk * D + Lk * Dv) * in_itemsize
        out_b = bb * (tq * Dv * in_itemsize + 2 * tq * Lk * attn_itemsize)
        return in_b + out_b

    if step_bytes(1, Lq) <= budget_bytes:
        # Whole Lq fits: optionally pack several batch elements per step.
        TQ = Lq
        BB = 1
        for cand in range(min(B, 8), 0, -1):
            if B % cand == 0 and step_bytes(cand, Lq) <= budget_bytes:
                BB = cand
                break
        return BB, TQ

    # Tile the query axis.  TQ must divide Lq and (since TQ != Lq) be a
    # multiple of 8 to satisfy the (8, 128) sublane constraint.
    for cand in (512, 256, 128):
        if Lq % cand == 0 and step_bytes(1, cand) <= budget_bytes:
            return 1, cand
    for cand in range(512, 7, -8):
        if Lq % cand == 0 and step_bytes(1, cand) <= budget_bytes:
            return 1, cand
    # Fallback: full Lq block (always layout-legal, may be VMEM-heavy).
    return 1, Lq


def scaled_dot_product_attention(q, k, v, temperature, q_block=None):
    """Pallas TPU version of ScaledDotProductAttention.forward (eval mode)."""
    B, Lq, D = q.shape
    Bk, Lk, Dk = k.shape
    Bv, Lkv, Dv = v.shape
    assert D == Dk and Bk == B and Bv == B and Lkv == Lk

    attn_dtype = q.dtype  # matches torch: outputs carry the input dtype
    in_itemsize = jnp.dtype(q.dtype).itemsize
    attn_itemsize = jnp.dtype(attn_dtype).itemsize

    if q_block is not None:
        assert Lq % q_block == 0
        BB, TQ = 1, q_block
    else:
        BB, TQ = _choose_tiles(B, Lq, Lk, D, Dv, in_itemsize, attn_itemsize)
    grid = (B // BB, Lq // TQ)

    temp_arr = jnp.asarray([temperature], dtype=jnp.float32)

    out_shapes = (
        jax.ShapeDtypeStruct((B, Lq, Dv), q.dtype),      # output
        jax.ShapeDtypeStruct((B, Lq, Lk), attn_dtype),   # attn
        jax.ShapeDtypeStruct((B, Lq, Lk), attn_dtype),   # log_attn
    )

    grid_spec = pltpu.PrefetchScalarGridSpec(
        num_scalar_prefetch=1,          # temperature -> SMEM (no recompiles)
        grid=grid,
        in_specs=[
            pl.BlockSpec((BB, TQ, D), lambda b, qi, t: (b, qi, 0)),
            pl.BlockSpec((BB, Lk, D), lambda b, qi, t: (b, 0, 0)),
            pl.BlockSpec((BB, Lk, Dv), lambda b, qi, t: (b, 0, 0)),
        ],
        out_specs=[
            pl.BlockSpec((BB, TQ, Dv), lambda b, qi, t: (b, qi, 0)),
            pl.BlockSpec((BB, TQ, Lk), lambda b, qi, t: (b, qi, 0)),
            pl.BlockSpec((BB, TQ, Lk), lambda b, qi, t: (b, qi, 0)),
        ],
    )

    return pl.pallas_call(
        _sdpa_kernel,
        out_shape=out_shapes,
        grid_spec=grid_spec,
        compiler_params=pltpu.CompilerParams(
            dimension_semantics=("parallel", "parallel"),
            vmem_limit_bytes=32 * 1024 * 1024,
        ),
    )(temp_arr, q, k, v)


def _reference(q, k, v, temperature):
    attn = jnp.einsum("bqd,bkd->bqk", q, k) / temperature
    log_attn = jax.nn.log_softmax(attn, axis=2)
    attn = jax.nn.softmax(attn, axis=2)
    out = jnp.einsum("bqk,bkd->bqd", attn, v)
    return out, attn, log_attn


def _check(q, k, v, temperature, q_block=None):
    out, attn, log_attn = scaled_dot_product_attention(q, k, v, temperature,
                                                       q_block=q_block)
    jax.block_until_ready((out, attn, log_attn))
    r_out, r_attn, r_log_attn = _reference(q, k, v, temperature)
    assert jnp.allclose(out, r_out, atol=1e-4, rtol=1e-4)
    assert jnp.allclose(attn, r_attn, atol=1e-5, rtol=1e-5)
    assert jnp.allclose(log_attn, r_log_attn, atol=1e-4, rtol=1e-4)


if __name__ == "__main__":
    key = jax.random.PRNGKey(0)
    kq, kk, kv = jax.random.split(key, 3)

    # Primary small demo shape (matches the module's typical few-shot usage).
    B, Lq, Lk, D, Dv = 2, 8, 8, 32, 32
    temperature = float(D) ** 0.5   # typical: sqrt(d_k)

    q = jax.random.normal(kq, (B, Lq, D), dtype=jnp.float32)
    k = jax.random.normal(kk, (B, Lk, D), dtype=jnp.float32)
    v = jax.random.normal(kv, (B, Lk, Dv), dtype=jnp.float32)
    _check(q, k, v, temperature)

    # Medium shape exercising the query-tiled (multi-grid-step) path.
    B2, Lq2, Lk2, D2, Dv2 = 2, 256, 128, 64, 64
    q2 = jax.random.normal(kq, (B2, Lq2, D2), dtype=jnp.float32)
    k2 = jax.random.normal(kk, (B2, Lk2, D2), dtype=jnp.float32)
    v2 = jax.random.normal(kv, (B2, Lk2, Dv2), dtype=jnp.float32)
    _check(q2, k2, v2, float(D2) ** 0.5, q_block=128)

    print("KERNEL_OK")
</pallas_src>

<mosaic_0001>
module attributes {stable_mosaic.version = 11 : i64} {
  func.func @_sdpa_kernel(%arg0: i32, %arg1: i32, %arg2: memref<1xf32, #tpu.memory_space<smem>>, %arg3: memref<2x8x32xf32, #tpu.memory_space<vmem>>, %arg4: memref<2x8x32xf32, #tpu.memory_space<vmem>>, %arg5: memref<2x8x32xf32, #tpu.memory_space<vmem>>, %arg6: memref<2x8x32xf32, #tpu.memory_space<vmem>>, %arg7: memref<2x8x8xf32, #tpu.memory_space<vmem>>, %arg8: memref<2x8x8xf32, #tpu.memory_space<vmem>>) attributes {dimension_semantics = [#tpu.dimension_semantics<parallel>, #tpu.dimension_semantics<parallel>], iteration_bounds = array<i64: 1, 1>, scalar_prefetch = 1 : i64, scratch_operands = 0 : i64, tpu.core_type = #tpu.core_type<tc>, window_params = [{transform_indices = @transform_0, window_bounds = array<i64: 2, 8, 32>}, {transform_indices = @transform_1, window_bounds = array<i64: 2, 8, 32>}, {transform_indices = @transform_2, window_bounds = array<i64: 2, 8, 32>}, {transform_indices = @transform_3, window_bounds = array<i64: 2, 8, 32>}, {transform_indices = @transform_4, window_bounds = array<i64: 2, 8, 8>}, {transform_indices = @transform_5, window_bounds = array<i64: 2, 8, 8>}]} {
    %c0 = arith.constant 0 : index
    %0 = memref.load %arg2[%c0] : memref<1xf32, #tpu.memory_space<smem>>
    %cst = arith.constant 1.000000e+00 : f32
    %1 = arith.divf %cst, %0 : f32
    %c0_0 = arith.constant 0 : index
    %c0_1 = arith.constant 0 : index
    %c0_2 = arith.constant 0 : index
    %2 = vector.load %arg3[%c0_0, %c0_1, %c0_2] : memref<2x8x32xf32, #tpu.memory_space<vmem>>, vector<2x8x32xf32>
    %c0_3 = arith.constant 0 : index
    %c0_4 = arith.constant 0 : index
    %c0_5 = arith.constant 0 : index
    %3 = vector.load %arg4[%c0_3, %c0_4, %c0_5] : memref<2x8x32xf32, #tpu.memory_space<vmem>>, vector<2x8x32xf32>
    %c0_6 = arith.constant 0 : index
    %c0_7 = arith.constant 0 : index
    %c0_8 = arith.constant 0 : index
    %4 = vector.load %arg5[%c0_6, %c0_7, %c0_8] : memref<2x8x32xf32, #tpu.memory_space<vmem>>, vector<2x8x32xf32>
    "tpu.trace_start"() <{level = 10 : i32, message = "bqd,bkd->bqk"}> : () -> ()
    %cst_9 = arith.constant dense<0.000000e+00> : vector<2x8x8xf32>
    %5 = tpu.matmul %2, %3, %cst_9 {dimension_numbers = #tpu.dot_dimension_numbers<[2], [2], [1], [1], [0, 0, 0, 1, 1, 1], [0], [0]>} : vector<2x8x32xf32>, vector<2x8x32xf32>, vector<2x8x8xf32> -> vector<2x8x8xf32>
    "tpu.trace_stop"() : () -> ()
    %6 = vector.broadcast %1 : f32 to vector<2x8x8xf32>
    %7 = arith.mulf %5, %6 : vector<2x8x8xf32>
    %cst_10 = arith.constant dense<0xFF800000> : vector<2x8xf32>
    %8 = vector.multi_reduction <maximumf>, %7, %cst_10 [2] : vector<2x8x8xf32> to vector<2x8xf32>
    %9 = vector.shape_cast %8 : vector<2x8xf32> to vector<2x8x1xf32>
    %10 = vector.broadcast %9 : vector<2x8x1xf32> to vector<2x8x8xf32>
    %11 = arith.subf %7, %10 : vector<2x8x8xf32>
    %12 = math.exp %11 : vector<2x8x8xf32>
    %cst_11 = arith.constant dense<0.000000e+00> : vector<2x8xf32>
    %13 = vector.multi_reduction <add>, %12, %cst_11 [2] : vector<2x8x8xf32> to vector<2x8xf32>
    %14 = vector.shape_cast %13 : vector<2x8xf32> to vector<2x8x1xf32>
    %15 = tpu.reciprocal %14 : vector<2x8x1xf32> -> vector<2x8x1xf32>
    %16 = vector.broadcast %15 : vector<2x8x1xf32> to vector<2x8x8xf32>
    %17 = arith.mulf %12, %16 : vector<2x8x8xf32>
    %18 = math.log %14 : vector<2x8x1xf32>
    %19 = vector.broadcast %18 : vector<2x8x1xf32> to vector<2x8x8xf32>
    %20 = arith.subf %11, %19 : vector<2x8x8xf32>
    "tpu.trace_start"() <{level = 10 : i32, message = "bqk,bkd->bqd"}> : () -> ()
    %cst_12 = arith.constant dense<0.000000e+00> : vector<2x8x32xf32>
    %21 = tpu.matmul %17, %4, %cst_12 {dimension_numbers = #tpu.dot_dimension_numbers<[2], [1], [1], [2], [0, 0, 0, 1, 1, 2], [0], [0]>} : vector<2x8x8xf32>, vector<2x8x32xf32>, vector<2x8x32xf32> -> vector<2x8x32xf32>
    "tpu.trace_stop"() : () -> ()
    %c0_13 = arith.constant 0 : index
    %c0_14 = arith.constant 0 : index
    %c0_15 = arith.constant 0 : index
    %22 = vector.load %arg6[%c0_13, %c0_14, %c0_15] : memref<2x8x32xf32, #tpu.memory_space<vmem>>, vector<2x8x32xf32>
    tpu.vector_store %arg6[%c0_13, %c0_14, %c0_15], %21 {strides = array<i32>} : memref<2x8x32xf32, #tpu.memory_space<vmem>>, vector<2x8x32xf32>,
    %c0_16 = arith.constant 0 : index
    %c0_17 = arith.constant 0 : index
    %c0_18 = arith.constant 0 : index
    %23 = vector.load %arg7[%c0_16, %c0_17, %c0_18] : memref<2x8x8xf32, #tpu.memory_space<vmem>>, vector<2x8x8xf32>
    tpu.vector_store %arg7[%c0_16, %c0_17, %c0_18], %17 {strides = array<i32>} : memref<2x8x8xf32, #tpu.memory_space<vmem>>, vector<2x8x8xf32>,
    %c0_19 = arith.constant 0 : index
    %c0_20 = arith.constant 0 : index
    %c0_21 = arith.constant 0 : index
    %24 = vector.load %arg8[%c0_19, %c0_20, %c0_21] : memref<2x8x8xf32, #tpu.memory_space<vmem>>, vector<2x8x8xf32>
    tpu.vector_store %arg8[%c0_19, %c0_20, %c0_21], %20 {strides = array<i32>} : memref<2x8x8xf32, #tpu.memory_space<vmem>>, vector<2x8x8xf32>,
    return
  }
  func.func @transform_0(%arg0: i32, %arg1: i32, %arg2: memref<1xf32, #tpu.memory_space<smem>>) -> (i32, i32, i32) {
    %c0_i32 = arith.constant 0 : i32
    %c0_i32_0 = arith.constant 0 : i32
    return %arg0, %arg1, %c0_i32 : i32, i32, i32
  }
  func.func @transform_1(%arg0: i32, %arg1: i32, %arg2: memref<1xf32, #tpu.memory_space<smem>>) -> (i32, i32, i32) {
    %c0_i32 = arith.constant 0 : i32
    %c0_i32_0 = arith.constant 0 : i32
    %c0_i32_1 = arith.constant 0 : i32
    return %arg0, %c0_i32, %c0_i32_0 : i32, i32, i32
  }
  func.func @transform_2(%arg0: i32, %arg1: i32, %arg2: memref<1xf32, #tpu.memory_space<smem>>) -> (i32, i32, i32) {
    %c0_i32 = arith.constant 0 : i32
    %c0_i32_0 = arith.constant 0 : i32
    %c0_i32_1 = arith.constant 0 : i32
    return %arg0, %c0_i32, %c0_i32_0 : i32, i32, i32
  }
  func.func @transform_3(%arg0: i32, %arg1: i32, %arg2: memref<1xf32, #tpu.memory_space<smem>>) -> (i32, i32, i32) {
    %c0_i32 = arith.constant 0 : i32
    %c0_i32_0 = arith.constant 0 : i32
    return %arg0, %arg1, %c0_i32 : i32, i32, i32
  }
  func.func @transform_4(%arg0: i32, %arg1: i32, %arg2: memref<1xf32, #tpu.memory_space<smem>>) -> (i32, i32, i32) {
    %c0_i32 = arith.constant 0 : i32
    %c0_i32_0 = arith.constant 0 : i32
    return %arg0, %arg1, %c0_i32 : i32, i32, i32
  }
  func.func @transform_5(%arg0: i32, %arg1: i32, %arg2: memref<1xf32, #tpu.memory_space<smem>>) -> (i32, i32, i32) {
    %c0_i32 = arith.constant 0 : i32
    %c0_i32_0 = arith.constant 0 : i32
    return %arg0, %arg1, %c0_i32 : i32, i32, i32
  }
}

</mosaic_0001>

<bundles_post_ra>
// kernel: tpu_custom_call.1
= control target key start
LH: loop header
LB: loop body
LE: loop exit
PB: predicated region body
PF: predicated region fallthrough
CT: control target
= control target key end

     0   :  { %13 = vsyncpa [#allocation5], 0  ;;  %s823_s0 = inlined_call_operand.<no memory space> [shape: f32[1], index: 0, kind: input, shape index: {}]   ;;  %s824_s1 = inlined_call_operand.hbm [shape: f32[2,8,32], index: 1, kind: input, shape index: {}]   ;;  %s825_s2 = inlined_call_operand.hbm [shape: f32[2,8,32], index: 2, kind: input, shape index: {}]   ;;  %s826_s3 = inlined_call_operand.hbm [shape: f32[2,8,32], index: 3, kind: input, shape index: {}]   ;;  %s827_s4 = inlined_call_operand.hbm [shape: f32[2,8,32], index: 4, kind: output, shape index: {0}]   ;;  %s828_s5 = inlined_call_operand.hbm [shape: f32[2,8,8], index: 5, kind: output, shape index: {1}]   ;;  %s829_s6 = inlined_call_operand.hbm [shape: f32[2,8,8], index: 6, kind: output, shape index: {2}]  }
   0x1   :  { %14 = vsyncpa [#allocation8], 0 }
   0x2   :  { %15 = vsyncpa [#allocation6], 0 }
   0x3   :  { %16 = vsyncpa [#allocation12], 0  ;;  %s658_s21 = smov [#allocation7]   ;;  %s659_s23 = smov [#allocation4]  }
   0x4   :  { %s34_s22 = sshll.u32 %s658_s21, 4  ;;  %s22_s24 = sshll.u32 %s659_s23, 4  ;;  %s35_s22 = int_to_ptr.vmem [resolvable:$true] %s34_s22  ;;  %s703_s24 = int_to_ptr.vmem [resolvable:$true] %s22_s24 }
   0x5   :  { %s518_s27 = scalar_lea.hbm %s825_s2, 256 }
   0x6   :  { %p519_p0 = scmp.ne.s32.totalorder %s825_s2, %s518_s27  ;;  %p522_p1 = scmp.lt.u32.totalorder %s518_s27, %s825_s2 }
   0x8   :  { %p524_p2 = pnand %p522_p1, %p519_p0 }
   0xa   :  { %527 = shalt.err (!%p524_p2)
}
   0xb   :  { %s528_s8 = scalar_lea.vmem %s35_s22, 256  ;;  %p533_p4 = scmp.lt.s32.totalorder %s35_s22, %s35_s22 }
   0xc   :  { %p529_p3 = scmp.ne.s32.totalorder %s35_s22, %s528_s8  ;;  %p534_p5 = scmp.lt.s32.totalorder %s528_s8, %s528_s8 }
   0xe   :  { %p535_p6 = por %p534_p5, %p533_p4 }
  0x10   :  { %p536_p7 = pnand %p535_p6, %p529_p3 }
  0x12   :  { %539 = shalt.err (!%p536_p7)
}
  0x13   :  { %s660_s9 = smov 128   ;;  %s661_s10 = smov 8  }
  0x14   :  { %40 = dma.hbm_to_vmem [thread:$0]  %s825_s2, 256, %s35_s22, [#allocation8], %s660_s9, %s660_s9, %s661_s10  }
  0x15   :  { %s540_s15 = scalar_lea.hbm %s824_s1, 256 }
  0x16   :  { %p541_p8 = scmp.ne.s32.totalorder %s824_s1, %s540_s15  ;;  %p544_p9 = scmp.lt.u32.totalorder %s540_s15, %s824_s1 }
  0x18   :  { %p546_p10 = pnand %p544_p9, %p541_p8 }
  0x1a   :  { %549 = shalt.err (!%p546_p10)
}
  0x1b   :  { %s550_s20 = scalar_lea.vmem %s703_s24, 256  ;;  %p555_p12 = scmp.lt.s32.totalorder %s703_s24, %s703_s24 }
  0x1c   :  { %p551_p11 = scmp.ne.s32.totalorder %s703_s24, %s550_s20  ;;  %p556_p13 = scmp.lt.s32.totalorder %s550_s20, %s550_s20 }
  0x1e   :  { %p557_p0 = por %p556_p13, %p555_p12 }
  0x20   :  { %p558_p1 = pnand %p557_p0, %p551_p11 }
  0x22   :  { %561 = shalt.err (!%p558_p1)
}
  0x23   :  { %28 = dma.hbm_to_vmem [thread:$0]  %s824_s1, 256, %s703_s24, [#allocation5], %s660_s9, %s660_s9, %s661_s10  }
  0x24   :  { %s662_s22 = smov [#allocation9]   ;;  %s562_s27 = scalar_lea.hbm %s826_s3, 256 }
  0x25   :  { %s46_s23 = sshll.u32 %s662_s22, 4  ;;  %p563_p2 = scmp.ne.s32.totalorder %s826_s3, %s562_s27  ;;  %s47_s23 = int_to_ptr.vmem [resolvable:$true] %s46_s23 }
  0x26   :  { %p566_p3 = scmp.lt.u32.totalorder %s562_s27, %s826_s3 }
  0x28   :  { %p568_p4 = pnand %p566_p3, %p563_p2 }
  0x2a   :  { %571 = shalt.err (!%p568_p4)
}
  0x2b   :  { %s572_s8 = scalar_lea.vmem %s47_s23, 256  ;;  %p577_p6 = scmp.lt.s32.totalorder %s47_s23, %s47_s23 }
  0x2c   :  { %p573_p5 = scmp.ne.s32.totalorder %s47_s23, %s572_s8  ;;  %p578_p7 = scmp.lt.s32.totalorder %s572_s8, %s572_s8 }
  0x2e   :  { %p579_p8 = por %p578_p7, %p577_p6 }
  0x30   :  { %p580_p9 = pnand %p579_p8, %p573_p5 }
  0x32   :  { %583 = shalt.err (!%p580_p9)
}
  0x33   :  { %52 = dma.hbm_to_vmem [thread:$0]  %s826_s3, 256, %s47_s23, [#allocation8], %s660_s9, %s660_s9, %s661_s10  }
  0x34   :  { %650 = dma.done.wait [#allocation5], 256  }
  0x35   :  { %651 = vsyncadd [#allocation5], 4294967040 }
  0x36   :  { %652 = dma.done.wait [#allocation8], 512  }
  0x37   :  { %653 = vsyncadd [#allocation8], 4294966784  ;;  %v63_v0 = vstv %s823_s0  ;;  %v663_v1 = vmov 0.0   ;;  %vm664_vm0 = vmmov 0   ;;  %vm72_vm1 = vcmask 261120   ;;  %v68_v2 = vld [vmem:[#allocation7] sm:$0xff] }
  0x38   :  { %472 = vmatprep.subr.mxu0 %v663_v1  ;;  %477 = vmatprep.subr.mxu1 %v663_v1  ;;  %504 = vrcp.f32 %v63_v0  ;;  %v69_v3 = vld [vmem:[#allocation7 + $0x8] sm:$0xff]  ;;  %v66_v4 = vld [vmem:[#allocation4] sm:$0xff]  ;;  %v67_v5 = vld [vmem:[#allocation4 + $0x8] sm:$0xff]  ;;  %vm228_vm2 = vcmask 64512   ;;  %s665_s3 = smov [#allocation11]  }
  0x39   :  { %474 = vmatprep.mubr.msk.f32.mxu0 %vm664_vm0, %v663_v1  ;;  %479 = vmatprep.mubr.msk.f32.mxu1 %vm664_vm0, %v663_v1  ;;  %v70_v26 = vld [vmem:[#allocation9] sm:$0xff]  ;;  %v71_v27 = vld [vmem:[#allocation9 + $0x8] sm:$0xff]  ;;  %s426_s13 = sshll.u32 %s665_s3, 4  ;;  %s427_s13 = int_to_ptr.vmem [resolvable:$true] %s426_s13 }
  0x3a   :  { %473 = vmatpush3.xpose.msk.msra.mxu0 %vm72_vm1, %v68_v2  ;;  %478 = vmatpush3.xpose.msk.msra.mxu1 %vm72_vm1, %v69_v3  ;;  %s584_s14 = scalar_lea.vmem %s427_s13, 256  ;;  %p589_p11 = scmp.lt.s32.totalorder %s427_s13, %s427_s13 }
  0x3b   :  { %482 = vmatprep.subr.mxu0 %v663_v1  ;;  %487 = vmatprep.subr.mxu1 %v663_v1  ;;  %p585_p10 = scmp.ne.s32.totalorder %s427_s13, %s584_s14  ;;  %p590_p12 = scmp.lt.s32.totalorder %s584_s14, %s584_s14 }
  0x3d   :  { %475 = vmatmul.mubr.msk.f32.vlgmr.msra.gmra.mrb[0].mxu0 %vm72_vm1, %v66_v4  ;;  %480 = vmatmul.mubr.msk.f32.vlgmr.msra.gmra.mrb[0].mxu1 %vm72_vm1, %v67_v5  ;;  %p591_p13 = por %p590_p12, %p589_p11 }
  0x3e   :  { %484 = vmatprep.mubr.msk.f32.mxu0 %vm664_vm0, %v663_v1  ;;  %489 = vmatprep.mubr.msk.f32.mxu1 %vm664_vm0, %v663_v1 }
  0x3f   :  { %483 = vmatpush3.msra.mxu0 %v70_v26  ;;  %488 = vmatpush3.msra.mxu1 %v71_v27  ;;  %p592_p0 = pnand %p591_p13, %p585_p10 }
  0x42   :  { %v505_v6 = vpop.eup %504 }
  0x43   :  { %492 = vpush %v505_v6 }
  0x74   :  { %s493_s0 = spop %492 }
  0x75   :  { %v225_v7 = vstv %s493_s0 }
 0x110   :  { %v145_v8 = vpop.f32.mrb[0].mxu0  ;;  %v221_v9 = vpop.f32.mrb[0].mxu1 }
 0x111   :  { %v226_v10 = vmul.f32 %v225_v7, %v145_v8  ;;  %v476_v11 = vpop.f32.mrb[1].mxu0  ;;  %v481_v12 = vpop.f32.mrb[1].mxu1  ;;  %v227_v13 = vmul.f32 %v225_v7, %v221_v9 }
 0x113   :  { %v229_v14 = vsel %vm228_vm2, %v226_v10, -inf  ;;  %v232_v15 = vsel %vm228_vm2, %v227_v13, -inf }
 0x114   :  { %230 = vmax.xlane.f32.xlu0 %v229_v14 }
 0x118   :  { %233 = vmax.xlane.f32.xlu0 %v232_v15 }
 0x1a1   :  { %v231_v16 = vpop.xlane.xlu0 %230 }
 0x1a2   :  { %v235_v17 = vsub.f32 %v226_v10, %v231_v16 }
 0x1a4   :  { %v237_v18 = vmul.f32 1.442695, %v235_v17 }
 0x1a5   :  { %v234_v19 = vpop.xlane.xlu0 %233 }
 0x1a6   :  { %506 = vpow2.f32 %v237_v18  ;;  %v236_v20 = vsub.f32 %v227_v13, %v234_v19 }
 0x1a8   :  { %v239_v21 = vmul.f32 1.442695, %v236_v20 }
 0x1aa   :  { %508 = vpow2.f32 %v239_v21 }
 0x1b0   :  { %v507_v22 = vpop.eup %506 }
 0x1b1   :  { %v241_v23 = vsel %vm228_vm2, %v507_v22, 0.0 }
 0x1b2   :  { %242 = vadd.xlane.f32.xlu1 %v241_v23 }
 0x1b4   :  { %v509_v24 = vpop.eup %508 }
 0x1b5   :  { %v244_v25 = vsel %vm228_vm2, %v509_v24, 0.0 }
 0x1b6   :  { %245 = vadd.xlane.f32.xlu1 %v244_v25 }
 0x23f   :  { %v243_v28 = vpop.xlane.xlu1 %242 }
 0x240   :  { %510 = vrcp.f32 %v243_v28 }
 0x241   :  { %512 = vlog2.f32 %v243_v28 }
 0x243   :  { %v246_v29 = vpop.xlane.xlu1 %245 }
 0x244   :  { %514 = vrcp.f32 %v246_v29 }
 0x245   :  { %516 = vlog2.f32 %v246_v29 }
 0x24a   :  { %v511_v30 = vpop.eup %510 }
 0x24b   :  { %v513_v31 = vpop.eup %512  ;;  %v249_v32 = vmul.f32 %v511_v30, %v507_v22 }
 0x24c   :  { %v252_v33 = vmul.f32 0.6931472, %v513_v31 }
 0x24d   :  { %485 = vmatmul.mubr.msk.f32.vlgmr.msra.gmra.mrb[2].mxu0 %vm228_vm2, %v249_v32  ;;  %405 = vst.msk [vmem:[#allocation11] sm:$0xff] %vm228_vm2, %v249_v32 }
 0x24e   :  { %v515_v34 = vpop.eup %514  ;;  %v255_v35 = vsub.f32 %v235_v17, %v252_v33 }
 0x24f   :  { %v517_v36 = vpop.eup %516  ;;  %v250_v37 = vmul.f32 %v515_v34, %v509_v24 }
 0x250   :  { %407 = vst.msk [vmem:[#allocation13] sm:$0xff] %vm228_vm2, %v255_v35  ;;  %v254_v38 = vmul.f32 0.6931472, %v517_v36 }
 0x251   :  { %406 = vst.msk [vmem:[#allocation11 + $0x8] sm:$0xff] %vm228_vm2, %v250_v37  ;;  %490 = vmatmul.mubr.msk.f32.vlgmr.msra.gmra.mrb[2].mxu1 %vm228_vm2, %v250_v37 }
 0x252   :  { %v256_v39 = vsub.f32 %v236_v20, %v254_v38 }
 0x254   :  { %408 = vst.msk [vmem:[#allocation13 + $0x8] sm:$0xff] %vm228_vm2, %v256_v39 }
 0x255   :  { %595 = shalt.err (!%p592_p0)
}
 0x256   :  { %s596_s17 = scalar_lea.hbm %s828_s5, 256 }
 0x257   :  { %p597_p1 = scmp.ne.s32.totalorder %s828_s5, %s596_s17  ;;  %p600_p2 = scmp.lt.u32.totalorder %s596_s17, %s828_s5 }
 0x259   :  { %p602_p3 = pnand %p600_p2, %p597_p1 }
 0x25b   :  { %605 = shalt.err (!%p602_p3)
}
 0x25c   :  { %432 = dma.vmem_to_hbm [thread:$0]  %s427_s13, 256, %s828_s5, [#allocation12], %s660_s9, %s660_s9, %s661_s10  }
 0x25d   :  { %s666_s23 = smov [#allocation13]  }
 0x25e   :  { %s438_s25 = sshll.u32 %s666_s23, 4  ;;  %s439_s25 = int_to_ptr.vmem [resolvable:$true] %s438_s25 }
 0x25f   :  { %s606_s26 = scalar_lea.vmem %s439_s25, 256  ;;  %p611_p5 = scmp.lt.s32.totalorder %s439_s25, %s439_s25 }
 0x260   :  { %p607_p4 = scmp.ne.s32.totalorder %s439_s25, %s606_s26  ;;  %p612_p6 = scmp.lt.s32.totalorder %s606_s26, %s606_s26 }
 0x262   :  { %p613_p7 = por %p612_p6, %p611_p5 }
 0x264   :  { %p614_p8 = pnand %p613_p7, %p607_p4 }
 0x266   :  { %617 = shalt.err (!%p614_p8)
}
 0x267   :  { %s618_s29 = scalar_lea.hbm %s829_s6, 256 }
 0x268   :  { %p619_p9 = scmp.ne.s32.totalorder %s829_s6, %s618_s29  ;;  %p622_p10 = scmp.lt.u32.totalorder %s618_s29, %s829_s6 }
 0x26a   :  { %p624_p11 = pnand %p622_p10, %p619_p9 }
 0x26c   :  { %627 = shalt.err (!%p624_p11)
}
 0x26d   :  { %444 = dma.vmem_to_hbm [thread:$0]  %s439_s25, 256, %s829_s6, [#allocation12], %s660_s9, %s660_s9, %s661_s10  }
 0x26e   :  { %s667_s11 = smov [#allocation10]  }
 0x26f   :  { %s414_s12 = sshll.u32 %s667_s11, 4  ;;  %s415_s12 = int_to_ptr.vmem [resolvable:$true] %s414_s12 }
 0x270   :  { %s628_s0 = scalar_lea.vmem %s415_s12, 256  ;;  %p633_p13 = scmp.lt.s32.totalorder %s415_s12, %s415_s12 }
 0x271   :  { %p629_p12 = scmp.ne.s32.totalorder %s415_s12, %s628_s0  ;;  %p634_p0 = scmp.lt.s32.totalorder %s628_s0, %s628_s0 }
 0x273   :  { %p635_p1 = por %p634_p0, %p633_p13 }
 0x275   :  { %p636_p2 = pnand %p635_p1, %p629_p12 }
 0x320   :  { %v326_v40 = vpop.f32.mrb[2].mxu0 }
 0x321   :  { %403 = vst.msk [vmem:[#allocation10] sm:$0xff] %vm72_vm1, %v326_v40  ;;  %v486_v41 = vpop.f32.mrb[3].mxu0 }
 0x324   :  { %v399_v42 = vpop.f32.mrb[2].mxu1 }
 0x325   :  { %404 = vst.msk [vmem:[#allocation10 + $0x8] sm:$0xff] %vm72_vm1, %v399_v42  ;;  %v491_v43 = vpop.f32.mrb[3].mxu1 }
 0x326   :  { %639 = shalt.err (!%p636_p2)
}
 0x327   :  { %s640_s13 = scalar_lea.hbm %s827_s4, 256 }
 0x328   :  { %p641_p3 = scmp.ne.s32.totalorder %s827_s4, %s640_s13  ;;  %p644_p4 = scmp.lt.u32.totalorder %s640_s13, %s827_s4 }
 0x32a   :  { %p646_p5 = pnand %p644_p4, %p641_p3 }
 0x32c   :  { %649 = shalt.err (!%p646_p5)
}
 0x32d   :  { %420 = dma.vmem_to_hbm [thread:$0]  %s415_s12, 256, %s827_s4, [#allocation6], %s660_s9, %s660_s9, %s661_s10  }
 0x32e   :  { %654 = dma.done.wait [#allocation6], 256  }
 0x32f   :  { %655 = vsyncadd [#allocation6], 4294967040 }
 0x330   :  { %656 = dma.done.wait [#allocation12], 512  }
 0x331   :  { %657 = vsyncadd [#allocation12], 4294966784 }
 0x332   :  { %454 = vsyncpa [#allocation5], 1 }
 0x333   :  { %455 = vsyncpa [#allocation8], 1 }
 0x334   :  { %456 = vsyncpa [#allocation6], 1 }
 0x335   :  { %457 = vsyncpa [#allocation12], 1 }

</bundles_post_ra>
